<compile_context>
chip_gen: v6e
topology: v6e:2x2x1
jax: 0.10.0
libtpu: 0.0.40
codegen_flags: <defaults>
</compile_context>

<pallas_src>
import functools

import numpy as np
import jax
import jax.numpy as jnp
from jax import lax
from jax.experimental import pallas as pl
from jax.experimental.pallas import tpu as pltpu


def make_kernel(k):
    """Matches torch `make_kernel`: outer product (if 1-D) + normalize."""
    k = np.asarray(k, dtype=np.float32)
    if k.ndim == 1:
        k = np.outer(k, k)
    k = k / k.sum()
    return k


# ---------------------------------------------------------------------------
# Pallas kernels (taps baked in as Python constants via functools.partial)
# ---------------------------------------------------------------------------

def _fill_padded_scratch(x_ref, up_ref, pad0, pad1):
    """Zero the FIR halo and copy the input block into the f32 VMEM scratch.

    The halo is re-zeroed every grid step (cheap: pad0/pad1 rows/cols) so
    correctness does not depend on which TensorCore saw step 0 when the
    'parallel' channel axis is split across v7x cores.
    """
    bc, h, w = x_ref.shape
    _, hp, wp = up_ref.shape
    if pad0 > 0:
        up_ref[:, 0:pad0, :] = jnp.zeros((bc, pad0, wp), jnp.float32)
        up_ref[:, :, 0:pad0] = jnp.zeros((bc, hp, pad0), jnp.float32)
    if pad1 > 0:
        up_ref[:, pad0 + h:hp, :] = jnp.zeros((bc, pad1, wp), jnp.float32)
        up_ref[:, :, pad0 + w:wp] = jnp.zeros((bc, hp, pad1), jnp.float32)
    up_ref[:, pad0:pad0 + h, pad0:pad0 + w] = x_ref[...].astype(jnp.float32)


def _blur_kernel_separable(x_ref, o_ref, up_ref, *, taps_y, taps_x, pad0, pad1):
    # x_ref:  (bc, H,  W ) unpadded input block, native layout (W on lanes)
    # o_ref:  (bc, Ho, Wo) output block
    # up_ref: (bc, Hp, Wp) f32 scratch holding the zero-padded input
    # Taps are pre-flipped, so this cross-correlation == true conv with k
    # (exactly what torch upfirdn2d's F.conv2d(flip(k)) computes).
    _, ho, wo = o_ref.shape
    _fill_padded_scratch(x_ref, up_ref, pad0, pad1)
    # Pass 1: vertical FIR along H (sublane-offset ref reads) -> (bc, Ho, Wp).
    tmp = taps_y[0] * up_ref[:, 0:ho, :]
    for ky in range(1, len(taps_y)):
        tmp = tmp + taps_y[ky] * up_ref[:, ky:ky + ho, :]
    # Pass 2: horizontal FIR along W as lane-slices of the loaded value (XLU).
    acc = taps_x[0] * tmp[:, :, 0:wo]
    for kx in range(1, len(taps_x)):
        acc = acc + taps_x[kx] * tmp[:, :, kx:kx + wo]
    o_ref[...] = acc.astype(o_ref.dtype)


def _blur_kernel_full(x_ref, o_ref, up_ref, *, taps_2d, pad0, pad1):
    # Fallback for a non-separable (explicit 2-D) FIR kernel.
    bc, _, _ = x_ref.shape
    _, ho, wo = o_ref.shape
    _fill_padded_scratch(x_ref, up_ref, pad0, pad1)
    acc = jnp.zeros((bc, ho, wo), jnp.float32)
    for ky, row in enumerate(taps_2d):
        band = up_ref[:, ky:ky + ho, :]          # load each row band once
        for kx, t in enumerate(row):
            if t == 0.0:
                continue
            acc = acc + t * band[:, :, kx:kx + wo]
    o_ref[...] = acc.astype(o_ref.dtype)


# ---------------------------------------------------------------------------
# VMEM budgeting (generation-aware)
# ---------------------------------------------------------------------------

def _vmem_capacity_bytes():
    try:
        return int(pltpu.get_tpu_info().vmem_capacity_bytes)
    except Exception:
        return 128 * 1024 * 1024           # v5e / v6e default


def _round_up(x, m):
    return ((x + m - 1) // m) * m


def _block_vmem_bytes(bc, h, w, hp, wp, ho, wo, in_bytes, out_bytes):
    """Rough per-grid-step VMEM footprint, (8,128) tiling aware."""
    def tile(r, c, eb):
        return _round_up(max(r, 1), 8) * _round_up(max(c, 1), 128) * eb
    inp = 2 * bc * tile(h, w, in_bytes)          # double-buffered input block
    outp = 2 * bc * tile(ho, wo, out_bytes)      # double-buffered output block
    scr = bc * tile(hp, wp, 4)                   # padded f32 scratch
    tmp = bc * tile(ho, wp, 4)                   # vertical-pass intermediate
    acc = bc * tile(ho, wo, 4)                   # accumulator value
    return inp + outp + scr + tmp + acc


def _pick_channel_block(nc, block_bytes_fn, budget):
    """Largest divisor of nc whose footprint fits the budget, preferring
    >= 2 grid steps so both v7x TensorCores get work."""
    divisors = sorted((d for d in range(1, nc + 1) if nc % d == 0), reverse=True)
    fitting = [d for d in divisors if block_bytes_fn(d) <= budget]
    if not fitting:
        return 1       # TODO(synk): H-band tiling with halo for huge images
    for d in fitting:
        if nc // d >= 2:
            return d
    return fitting[0]


# ---------------------------------------------------------------------------
# Wrapper
# ---------------------------------------------------------------------------

def blur_upfirdn2d(x, pad, *, taps_1d=None, taps_2d=None):
    """upfirdn2d(x, k, up=1, down=1, pad=(p0, p1)) for NCHW x (Pallas TPU)."""
    assert (taps_1d is None) != (taps_2d is None)
    n, c, h, w = x.shape
    pad0, pad1 = pad

    # Negative pads crop (upfirdn2d semantics); rare for Blur, done in wrapper.
    if pad0 < 0 or pad1 < 0:
        ct, cb = max(-pad0, 0), max(-pad1, 0)
        x = x[:, :, ct:h - cb, ct:w - cb]
        h, w = h - ct - cb, w - ct - cb
        pad0, pad1 = max(pad0, 0), max(pad1, 0)

    if taps_1d is not None:
        kh = kw = len(taps_1d)
    else:
        kh, kw = len(taps_2d), len(taps_2d[0])

    hp, wp = h + pad0 + pad1, w + pad0 + pad1
    ho, wo = hp - kh + 1, wp - kw + 1
    assert ho > 0 and wo > 0, "output would be empty"

    nc = n * c
    xr = x.reshape(nc, h, w)          # free: merges leading dims, no transpose

    in_bytes = int(x.dtype.itemsize)
    vmem_cap = _vmem_capacity_bytes()
    budget = int(vmem_cap * 0.45)     # ~29 MiB on v7x, ~58 MiB on v5e/v6e
    bytes_fn = functools.partial(_block_vmem_bytes, h=h, w=w, hp=hp, wp=wp,
                                 ho=ho, wo=wo, in_bytes=in_bytes,
                                 out_bytes=in_bytes)
    bc = _pick_channel_block(nc, bytes_fn, budget)
    need = bytes_fn(bc)
    vmem_limit = int(min(max(need + (8 << 20), 32 << 20), vmem_cap * 0.9))
    grid_c = nc // bc

    if taps_1d is not None:
        kern = functools.partial(_blur_kernel_separable, taps_y=taps_1d,
                                 taps_x=taps_1d, pad0=pad0, pad1=pad1)
    else:
        kern = functools.partial(_blur_kernel_full, taps_2d=taps_2d,
                                 pad0=pad0, pad1=pad1)

    out = pl.pallas_call(
        kern,
        out_shape=jax.ShapeDtypeStruct((nc, ho, wo), x.dtype),
        grid_spec=pltpu.PrefetchScalarGridSpec(
            num_scalar_prefetch=0,
            grid=(grid_c,),
            in_specs=[pl.BlockSpec((bc, h, w), lambda i: (i, 0, 0))],
            out_specs=pl.BlockSpec((bc, ho, wo), lambda i: (i, 0, 0)),
            scratch_shapes=[pltpu.VMEM((bc, hp, wp), jnp.float32)],
        ),
        compiler_params=pltpu.CompilerParams(
            dimension_semantics=("parallel",),
            vmem_limit_bytes=vmem_limit),
    )(xr)

    return out.reshape(n, c, ho, wo)


class Blur:
    """JAX/Pallas port of the PyTorch Blur module: out = upfirdn2d(x, k, pad=pad)."""

    def __init__(self, kernel, pad, upsample_factor=1):
        k1 = np.asarray(kernel, dtype=np.float32)
        k2d = make_kernel(kernel)
        if upsample_factor > 1:
            k2d = k2d * (upsample_factor ** 2)
        self.kernel = jnp.asarray(k2d)                 # parity with torch buffer
        self.pad = (int(pad[0]), int(pad[1]))

        if k1.ndim == 1:
            # Separable: k2d == outer(k1n, k1n), k1n = k / sum(k) * factor.
            k1n = (k1 / k1.sum()) * float(upsample_factor)
            self._taps_1d = tuple(float(v) for v in k1n[::-1])      # pre-flipped
            self._taps_2d = None
        else:
            k2f = np.asarray(k2d)[::-1, ::-1]
            self._taps_1d = None
            self._taps_2d = tuple(tuple(float(v) for v in row) for row in k2f)

    def __call__(self, x):
        return blur_upfirdn2d(x, self.pad,
                              taps_1d=self._taps_1d, taps_2d=self._taps_2d)


# ---------------------------------------------------------------------------
# Pure-JAX reference (matches torch upfirdn2d with up=down=1)
# ---------------------------------------------------------------------------

def ref_blur(x, k2d, pad):
    n, c, h, w = x.shape
    pad0, pad1 = pad
    inp = x.reshape(n * c, 1, h, w).astype(jnp.float32)
    wf = jnp.asarray(k2d)[::-1, ::-1][None, None]      # OIHW, flipped -> true conv
    out = lax.conv_general_dilated(
        inp, wf, window_strides=(1, 1),
        padding=((pad0, pad1), (pad0, pad1)),
        dimension_numbers=("NCHW", "OIHW", "NCHW"))
    return out.reshape(n, c, out.shape[2], out.shape[3]).astype(x.dtype)


if __name__ == "__main__":
    key = jax.random.PRNGKey(0)
    x = jax.random.normal(key, (2, 4, 16, 16), dtype=jnp.float32)

    # StyleGAN2-style blur used after an upsampling conv:
    # kernel [1,3,3,1], pad=(2,1), upsample_factor=2 -> spatial size preserved.
    blur = Blur([1.0, 3.0, 3.0, 1.0], pad=(2, 1), upsample_factor=2)
    y = jax.block_until_ready(blur(x))
    assert y.shape == (2, 4, 16, 16), y.shape
    y_ref = ref_blur(x, blur.kernel, blur.pad)
    np.testing.assert_allclose(np.asarray(y), np.asarray(y_ref),
                               rtol=1e-5, atol=1e-5)

    # Plain blur (no upsample scaling), kernel [1,2,1], pad=(1,1).
    blur2 = Blur([1.0, 2.0, 1.0], pad=(1, 1))
    y2 = jax.block_until_ready(blur2(x))
    assert y2.shape == (2, 4, 16, 16), y2.shape
    y2_ref = ref_blur(x, blur2.kernel, blur2.pad)
    np.testing.assert_allclose(np.asarray(y2), np.asarray(y2_ref),
                               rtol=1e-5, atol=1e-5)

    print("KERNEL_OK")
</pallas_src>

<mosaic_0001>
module attributes {stable_mosaic.version = 11 : i64} {
  func.func @_blur_kernel_separable(%arg0: i32, %arg1: memref<4x16x16xf32, #tpu.memory_space<vmem>>, %arg2: memref<4x16x16xf32, #tpu.memory_space<vmem>>, %arg3: memref<4x19x19xf32, #tpu.memory_space<vmem>>) attributes {dimension_semantics = [#tpu.dimension_semantics<parallel>], iteration_bounds = array<i64: 2>, scalar_prefetch = 0 : i64, scratch_operands = 1 : i64, tpu.core_type = #tpu.core_type<tc>, window_params = [{transform_indices = @transform_0, window_bounds = array<i64: 4, 16, 16>}, {transform_indices = @transform_1, window_bounds = array<i64: 4, 16, 16>}]} {
    %cst = arith.constant 0.000000e+00 : f32
    %0 = vector.broadcast %cst : f32 to vector<4x2x19xf32>
    %c0 = arith.constant 0 : index
    %c0_0 = arith.constant 0 : index
    %c0_1 = arith.constant 0 : index
    %1 = vector.load %arg3[%c0, %c0_0, %c0_1] : memref<4x19x19xf32, #tpu.memory_space<vmem>>, vector<4x2x19xf32>
    tpu.vector_store %arg3[%c0, %c0_0, %c0_1], %0 {strides = array<i32>} : memref<4x19x19xf32, #tpu.memory_space<vmem>>, vector<4x2x19xf32>,
    %cst_2 = arith.constant 0.000000e+00 : f32
    %2 = vector.broadcast %cst_2 : f32 to vector<4x19x2xf32>
    %c0_3 = arith.constant 0 : index
    %c0_4 = arith.constant 0 : index
    %c0_5 = arith.constant 0 : index
    %3 = vector.load %arg3[%c0_3, %c0_4, %c0_5] : memref<4x19x19xf32, #tpu.memory_space<vmem>>, vector<4x19x2xf32>
    tpu.vector_store %arg3[%c0_3, %c0_4, %c0_5], %2 {strides = array<i32>} : memref<4x19x19xf32, #tpu.memory_space<vmem>>, vector<4x19x2xf32>,
    %cst_6 = arith.constant 0.000000e+00 : f32
    %4 = vector.broadcast %cst_6 : f32 to vector<4x1x19xf32>
    %c0_7 = arith.constant 0 : index
    %c18 = arith.constant 18 : index
    %c0_8 = arith.constant 0 : index
    %5 = vector.load %arg3[%c0_7, %c18, %c0_8] : memref<4x19x19xf32, #tpu.memory_space<vmem>>, vector<4x1x19xf32>
    tpu.vector_store %arg3[%c0_7, %c18, %c0_8], %4 {strides = array<i32>} : memref<4x19x19xf32, #tpu.memory_space<vmem>>, vector<4x1x19xf32>,
    %cst_9 = arith.constant 0.000000e+00 : f32
    %6 = vector.broadcast %cst_9 : f32 to vector<4x19x1xf32>
    %c0_10 = arith.constant 0 : index
    %c0_11 = arith.constant 0 : index
    %c18_12 = arith.constant 18 : index
    %7 = vector.load %arg3[%c0_10, %c0_11, %c18_12] : memref<4x19x19xf32, #tpu.memory_space<vmem>>, vector<4x19x1xf32>
    tpu.vector_store %arg3[%c0_10, %c0_11, %c18_12], %6 {strides = array<i32>} : memref<4x19x19xf32, #tpu.memory_space<vmem>>, vector<4x19x1xf32>,
    %c0_13 = arith.constant 0 : index
    %c0_14 = arith.constant 0 : index
    %c0_15 = arith.constant 0 : index
    %8 = vector.load %arg1[%c0_13, %c0_14, %c0_15] : memref<4x16x16xf32, #tpu.memory_space<vmem>>, vector<4x16x16xf32>
    %c0_16 = arith.constant 0 : index
    %c2 = arith.constant 2 : index
    %c2_17 = arith.constant 2 : index
    %9 = vector.load %arg3[%c0_16, %c2, %c2_17] : memref<4x19x19xf32, #tpu.memory_space<vmem>>, vector<4x16x16xf32>
    tpu.vector_store %arg3[%c0_16, %c2, %c2_17], %8 {strides = array<i32>} : memref<4x19x19xf32, #tpu.memory_space<vmem>>, vector<4x16x16xf32>,
    %c0_18 = arith.constant 0 : index
    %c0_19 = arith.constant 0 : index
    %c0_20 = arith.constant 0 : index
    %10 = vector.load %arg3[%c0_18, %c0_19, %c0_20] : memref<4x19x19xf32, #tpu.memory_space<vmem>>, vector<4x16x19xf32>
    %cst_21 = arith.constant 2.500000e-01 : f32
    %11 = vector.broadcast %cst_21 : f32 to vector<4x16x19xf32>
    %12 = arith.mulf %11, %10 : vector<4x16x19xf32>
    %c0_22 = arith.constant 0 : index
    %c1 = arith.constant 1 : index
    %c0_23 = arith.constant 0 : index
    %13 = vector.load %arg3[%c0_22, %c1, %c0_23] : memref<4x19x19xf32, #tpu.memory_space<vmem>>, vector<4x16x19xf32>
    %cst_24 = arith.constant 7.500000e-01 : f32
    %14 = vector.broadcast %cst_24 : f32 to vector<4x16x19xf32>
    %15 = arith.mulf %14, %13 : vector<4x16x19xf32>
    %16 = arith.addf %12, %15 : vector<4x16x19xf32>
    %c0_25 = arith.constant 0 : index
    %c2_26 = arith.constant 2 : index
    %c0_27 = arith.constant 0 : index
    %17 = vector.load %arg3[%c0_25, %c2_26, %c0_27] : memref<4x19x19xf32, #tpu.memory_space<vmem>>, vector<4x16x19xf32>
    %cst_28 = arith.constant 7.500000e-01 : f32
    %18 = vector.broadcast %cst_28 : f32 to vector<4x16x19xf32>
    %19 = arith.mulf %18, %17 : vector<4x16x19xf32>
    %20 = arith.addf %16, %19 : vector<4x16x19xf32>
    %c0_29 = arith.constant 0 : index
    %c3 = arith.constant 3 : index
    %c0_30 = arith.constant 0 : index
    %21 = vector.load %arg3[%c0_29, %c3, %c0_30] : memref<4x19x19xf32, #tpu.memory_space<vmem>>, vector<4x16x19xf32>
    %cst_31 = arith.constant 2.500000e-01 : f32
    %22 = vector.broadcast %cst_31 : f32 to vector<4x16x19xf32>
    %23 = arith.mulf %22, %21 : vector<4x16x19xf32>
    %24 = arith.addf %20, %23 : vector<4x16x19xf32>
    %25 = vector.extract_strided_slice %24 {offsets = [0, 0, 0], sizes = [4, 16, 16], strides = [1, 1, 1]} : vector<4x16x19xf32> to vector<4x16x16xf32>
    %cst_32 = arith.constant 2.500000e-01 : f32
    %26 = vector.broadcast %cst_32 : f32 to vector<4x16x16xf32>
    %27 = arith.mulf %26, %25 : vector<4x16x16xf32>
    %28 = vector.extract_strided_slice %24 {offsets = [0, 0, 1], sizes = [4, 16, 16], strides = [1, 1, 1]} : vector<4x16x19xf32> to vector<4x16x16xf32>
    %cst_33 = arith.constant 7.500000e-01 : f32
    %29 = vector.broadcast %cst_33 : f32 to vector<4x16x16xf32>
    %30 = arith.mulf %29, %28 : vector<4x16x16xf32>
    %31 = arith.addf %27, %30 : vector<4x16x16xf32>
    %32 = vector.extract_strided_slice %24 {offsets = [0, 0, 2], sizes = [4, 16, 16], strides = [1, 1, 1]} : vector<4x16x19xf32> to vector<4x16x16xf32>
    %cst_34 = arith.constant 7.500000e-01 : f32
    %33 = vector.broadcast %cst_34 : f32 to vector<4x16x16xf32>
    %34 = arith.mulf %33, %32 : vector<4x16x16xf32>
    %35 = arith.addf %31, %34 : vector<4x16x16xf32>
    %36 = vector.extract_strided_slice %24 {offsets = [0, 0, 3], sizes = [4, 16, 16], strides = [1, 1, 1]} : vector<4x16x19xf32> to vector<4x16x16xf32>
    %cst_35 = arith.constant 2.500000e-01 : f32
    %37 = vector.broadcast %cst_35 : f32 to vector<4x16x16xf32>
    %38 = arith.mulf %37, %36 : vector<4x16x16xf32>
    %39 = arith.addf %35, %38 : vector<4x16x16xf32>
    %c0_36 = arith.constant 0 : index
    %c0_37 = arith.constant 0 : index
    %c0_38 = arith.constant 0 : index
    %40 = vector.load %arg2[%c0_36, %c0_37, %c0_38] : memref<4x16x16xf32, #tpu.memory_space<vmem>>, vector<4x16x16xf32>
    tpu.vector_store %arg2[%c0_36, %c0_37, %c0_38], %39 {strides = array<i32>} : memref<4x16x16xf32, #tpu.memory_space<vmem>>, vector<4x16x16xf32>,
    return
  }
  func.func @transform_0(%arg0: i32) -> (i32, i32, i32) {
    %c0_i32 = arith.constant 0 : i32
    %c0_i32_0 = arith.constant 0 : i32
    %c0_i32_1 = arith.constant 0 : i32
    return %arg0, %c0_i32, %c0_i32_0 : i32, i32, i32
  }
  func.func @transform_1(%arg0: i32) -> (i32, i32, i32) {
    %c0_i32 = arith.constant 0 : i32
    %c0_i32_0 = arith.constant 0 : i32
    %c0_i32_1 = arith.constant 0 : i32
    return %arg0, %c0_i32, %c0_i32_0 : i32, i32, i32
  }
}

</mosaic_0001>

<bundles_post_ra>
// kernel: tpu_custom_call.1
= control target key start
LH: loop header
LB: loop body
LE: loop exit
PB: predicated region body
PF: predicated region fallthrough
CT: control target
= control target key end

     0   :  { %6 = vsyncpa [#allocation4], 0  ;;  %s967_s0 = inlined_call_operand.hbm [shape: f32[8,16,16], index: 0, kind: input, shape index: {}]   ;;  %s968_s1 = inlined_call_operand.hbm [shape: f32[8,16,16], index: 1, kind: output, shape index: {}]  }
   0x1   :  { %8 = vsyncpa [#allocation4 + $0x1], 0 }
   0x2   :  { %9 = vsyncpa [#allocation5], 0 }
   0x3   :  { %11 = vsyncpa [#allocation5 + $0x1], 0  ;;  %s728_s6 = smov 0   ;;  %s730_s7 = smov 0  }
   0x4   :  { %s732_s8 = smov 0   ;;  %s734_s9 = smov 0  }
   0x5 LB: > { %s749_s10 = sadd.s32 4294967295, %s705_s9   ;;  %s538_s11 = sadd.s32 4294967294, %s705_s9   ;;  %s705_s9 = sphi %s734_s9, %s983_s9   ;;  %s701_s8 = sphi %s732_s8, %s982_s8   ;;  %s697_s7 = sphi %s730_s7, %s981_s7   ;;  %s693_s6 = sphi %s728_s6, %s980_s6  }
   0x6   : > { %s753_s12 = sadd.s32 1, %s705_s9   ;;  %s24_s13 = sadd.s32 1, %s701_s8 }
   0x7   : > { %s21_s14 = ssub.s32 %s705_s9, %s753_s12  ;;  %p31_p0 = scmp.ne.s32.totalorder %s701_s8, %s697_s7 }
   0x8   : > { %p22_p1 = scmp.eq.s32.totalorder %s21_s14, 0  ;;  %p32_p2 = scmp.eq.s32.totalorder %s705_s9, 0 }
   0x9   : > { %p37_p3 = scmp.ne.s32.totalorder %s697_s7, %s693_s6  ;;  %p38_p4 = scmp.eq.s32.totalorder %s749_s10, 0 }
   0xa   : > { %s765_s15 = scalar_select %p22_p1, %s701_s8, %s24_s13  }
   0xb   : > { %p767_p5 = por %p32_p2, %p31_p0  ;;  %p771_p6 = por %p38_p4, %p37_p3 }
   0xc   : > { %p61_p7 = scmp.eq.s32.totalorder %s749_s10, 1  ;;  %p67_p8 = scmp.eq.s32.totalorder %s538_s11, 1 }
   0xd   : > { %s972_s17 = scalar_select %p771_p6, 1, 0 }
   0xe   : > { %p570_p10 = scmp.lt.s32.totalorder %s705_s9, 2  ;;  %p778_p11 = por %p61_p7, %p31_p0 }
   0xf   : > { %p782_p12 = por %p67_p8, %p37_p3  ;;  %s87_s20 = sand.u32 1, %s701_s8  }
  0x10   : > { %s973_s18 = scalar_select %p778_p11, 1, 0 }
  0x11   : > { %s974_s19 = scalar_select %p782_p12, 1, 0 }
  0x12   : > { %s555_s21 = sshll.u32 %s705_s9, 10  ;;  %s541_s22 = sshll.u32 %s87_s20, 6 }
  0x13   : > { %s791_s25 = scalar_lea.hbm %s967_s0, %s555_s21  ;;  %s91_s26 = scalar_lea.vmem [#allocation3], %s541_s22 }
  0x14   : > { %s99_s27 = sshll.u32 %s91_s26, 4  ;;  %p795_p13 = pnand %p570_p10, %p767_p5  ;;  %s799_s27 = int_to_ptr.vmem [resolvable:$true] %s99_s27 }
  0x15   : > { %s801_s29 = scalar_lea.sflag [#allocation4], %s87_s20  ;;  %s613_s30 = scalar_lea.hbm %s791_s25, 1024 }
  0x16   : > { %p614_p0 = scmp.ne.s32.totalorder %s791_s25, %s613_s30  ;;  %p615_p1 = pneg %p795_p13 }
  0x17   : > { %s618_s4 = scalar_lea.hbm %s967_s0, 2048  ;;  %p619_p4 = scmp.lt.s32.totalorder %s791_s25, %s967_s0 }
  0x18   : > { %p616_p2 = pnand %p615_p1, %p614_p0  ;;  %p620_p5 = scmp.lt.s32.totalorder %s618_s4, %s613_s30 }
  0x1a   : > { %p617_p3 = pneg %p616_p2  ;;  %p621_p7 = por %p620_p5, %p619_p4 }
  0x1c   : > { %p622_p8 = pnand %p621_p7, %p617_p3 }
  0x1e   : > { %625 = shalt.err (!%p622_p8)
}
  0x1f   : > { %s626_s13 = scalar_lea.vmem %s799_s27, 1024  ;;  %s707_s14 = smov [#allocation3]  }
  0x20   : > { %p627_p10 = scmp.ne.s32.totalorder %s799_s27, %s626_s13  ;;  %s631_s16 = sshll.u32 %s707_s14, 4  ;;  %s632_s16 = int_to_ptr.vmem [resolvable:$false] %s631_s16 }
  0x21   : > { %s633_s20 = scalar_lea.vmem %s632_s16, 2048  ;;  %p634_p2 = scmp.lt.s32.totalorder %s799_s27, %s632_s16 }
  0x22   : > { %p629_p9 = pnand %p627_p10, %p615_p1  ;;  %p635_p12 = scmp.lt.s32.totalorder %s633_s20, %s626_s13 }
  0x24   : > { %p630_p0 = pneg %p629_p9  ;;  %p636_p11 = por %p635_p12, %p634_p2 }
  0x26   : > { %p637_p6 = pnand %p636_p11, %p630_p0 }
  0x28   : > { %640 = shalt.err (!%p637_p6)
}
  0x29   : > { %s708_s21 = smov 128   ;;  %s709_s22 = smov 8  }
  0x2a   : > { %565 = dma.hbm_to_vmem [thread:$0]  (!%p795_p13), %s791_s25, 1024, %s799_s27, %s801_s29, %s708_s21, %s708_s21, %s709_s22  }
  0x2b   : > { %p545_p9 = scmp.ge.s32.totalorder %s705_s9, 1  ;;  %p107_p1 = scmp.lt.s32.totalorder %s705_s9, 3 }
  0x2d   : > { %p108_p3 = pnand %p545_p9, %p107_p1 }
  0x2e   : > { %s825_s23 = sand.u32 (!%p108_p3), 1, %s697_s7   ;;  %p976_p6 = scmp.ne.s32.totalorder (!%p108_p3), %s972_s17, 0 }
  0x2f   : > { %111 = sbr.rel (%p108_p3) target bundleno = 370 (0x172), region = 24  ;;  %s546_s24 = sshll.u32 (!%p108_p3), %s825_s23, 6 }
  0x30   : > { %s114_s26 = scalar_lea.sflag (!%p108_p3), [#allocation4], %s825_s23  ;;  %s831_s30 = scalar_lea.vmem (!%p108_p3), [#allocation3], %s546_s24 }
  0x34   : > { %684 = dma.done.wait (%p976_p6), %s114_s26, 1024  }
  0x35   : > { %686 = vsyncadd (%p976_p6), %s114_s26, 4294966272  ;;  %vm138_vm0 = vcmask 148480   ;;  %vm143_vm1 = vcmask 15360   ;;  %vm162_vm2 = vcmask 154768   ;;  %v710_v0 = vmov 0.0   ;;  %v178_v1 = vld [vmem:[%s831_s30 + $0x10] sm:$0xff] }
  0x36   : > { %140 = vst.msk [vmem:[#allocation2 + $0x18] sm:$0x3] %vm138_vm0, %v710_v0  ;;  %139 = vst.msk [vmem:[#allocation2] sm:$0x3] %vm138_vm0, %v710_v0  ;;  %vm146_vm3 = vcmask 10240   ;;  %vm157_vm4 = vcmask 147456  }
  0x37   : > { %149 = vst.msk [vmem:[#allocation2 + $0x20] sm:$0xff] %vm143_vm1, %v710_v0  ;;  %145 = vst.msk [vmem:[#allocation2 + $0x8] sm:$0xff] %vm143_vm1, %v710_v0  ;;  %vm165_vm5 = vcmask 149648   ;;  %v176_v2 = vld [vmem:[%s831_s30] sm:$0xff]  ;;  %s711_s17 = smov 2   ;;  %v179_v3 = vld [vmem:[%s831_s30 + $0x18] sm:$0xff] }
  0x38   : > { %141 = vst.msk [vmem:[#allocation2 + $0x30] sm:$0x3] %vm138_vm0, %v710_v0  ;;  %142 = vst.msk [vmem:[#allocation2 + $0x48] sm:$0x3] %vm138_vm0, %v710_v0  ;;  %196 = vrot.lane.b32.xlu1 %v178_v1, %s711_s17  ;;  %192 = vrot.lane.b32.xlu0 %v176_v2, %s711_s17  ;;  %v177_v4 = vld [vmem:[%s831_s30 + $0x8] sm:$0xff]  ;;  %v180_v6 = vld [vmem:[%s831_s30 + $0x20] sm:$0xff] }
  0x39   : > { %152 = vst.msk [vmem:[#allocation2 + $0x38] sm:$0xff] %vm143_vm1, %v710_v0  ;;  %155 = vst.msk [vmem:[#allocation2 + $0x50] sm:$0xff] %vm143_vm1, %v710_v0  ;;  %v181_v5 = vld [vmem:[%s831_s30 + $0x28] sm:$0xff]  ;;  %v183_v7 = vld [vmem:[%s831_s30 + $0x38] sm:$0xff]  ;;  %vm216_vm6 = vcmask 146448   ;;  %s712_s25 = smov 127  }
  0x3a   : > { %148 = vst.msk [vmem:[#allocation2 + $0x18] sm:$0xff] %vm143_vm1, %v710_v0  ;;  %144 = vst.msk [vmem:[#allocation2] sm:$0xff] %vm143_vm1, %v710_v0  ;;  %v182_v8 = vld [vmem:[%s831_s30 + $0x30] sm:$0xff]  ;;  %s713_s27 = smov 126   ;;  %s714_s28 = smov 125   ;;  %vm441_vm7 = vcmask 130048  }
  0x3b   : > { %168 = vst.msk [vmem:[#allocation2 + $0x20] sm:$0xff] %vm162_vm2, %v710_v0  ;;  %164 = vst.msk [vmem:[#allocation2 + $0x8] sm:$0xff] %vm162_vm2, %v710_v0  ;;  %s899_s29 = scalar_lea.vmem [#allocation6], %s546_s24  ;;  %s557_s2 = sshll.u32 %s749_s10, 10 }
  0x3c   : > { %151 = vst.msk [vmem:[#allocation2 + $0x30] sm:$0xff] %vm143_vm1, %v710_v0  ;;  %154 = vst.msk [vmem:[#allocation2 + $0x48] sm:$0xff] %vm143_vm1, %v710_v0  ;;  %198 = vrot.lane.b32.xlu1 %v179_v3, %s711_s17  ;;  %194 = vrot.lane.b32.xlu0 %v177_v4, %s711_s17  ;;  %s465_s3 = sshll.u32 %s899_s29, 4  ;;  %s920_s11 = scalar_lea.hbm %s968_s1, %s557_s2  ;;  %s922_s3 = int_to_ptr.vmem [resolvable:$true] %s465_s3 }
  0x3d   : > { %171 = vst.msk [vmem:[#allocation2 + $0x38] sm:$0xff] %vm162_vm2, %v710_v0  ;;  %174 = vst.msk [vmem:[#allocation2 + $0x50] sm:$0xff] %vm162_vm2, %v710_v0  ;;  %s451_s10 = scalar_lea.sflag [#allocation5], %s825_s23  ;;  %s641_s13 = scalar_lea.vmem %s922_s3, 1024 }
  0x3e   : > { %150 = vst.msk [vmem:[#allocation2 + $0x28] sm:$0x7] %vm146_vm3, %v710_v0  ;;  %147 = vst.msk [vmem:[#allocation2 + $0x10] sm:$0x7] %vm146_vm3, %v710_v0  ;;  %p642_p11 = scmp.ne.s32.totalorder %s922_s3, %s641_s13  ;;  %p977_p12 = scmp.ne.s32.totalorder %s973_s18, 0 }
  0x3f   : > { %153 = vst.msk [vmem:[#allocation2 + $0x40] sm:$0x7] %vm146_vm3, %v710_v0  ;;  %156 = vst.msk [vmem:[#allocation2 + $0x58] sm:$0x7] %vm146_vm3, %v710_v0  ;;  %s715_s14 = smov [#allocation6]  }
  0x40   : > { %167 = vst.msk [vmem:[#allocation2 + $0x18] sm:$0xff] %vm162_vm2, %v710_v0  ;;  %163 = vst.msk [vmem:[#allocation2] sm:$0xff] %vm162_vm2, %v710_v0  ;;  %202 = vrot.lane.b32.xlu1 %v181_v5, %s711_s17  ;;  %200 = vrot.lane.b32.xlu0 %v180_v6, %s711_s17  ;;  %p643_p13 = pnand %p642_p11, %p977_p12  ;;  %s645_s16 = sshll.u32 %s715_s14, 4  ;;  %s646_s16 = int_to_ptr.vmem [resolvable:$false] %s645_s16 }
  0x41   : > { %159 = vst.msk [vmem:[#allocation2 + $0x2a] sm:$0x1] %vm157_vm4, %v710_v0  ;;  %158 = vst.msk [vmem:[#allocation2 + $0x12] sm:$0x1] %vm157_vm4, %v710_v0  ;;  %s647_s20 = scalar_lea.vmem %s646_s16, 2048  ;;  %p648_p5 = scmp.lt.s32.totalorder %s922_s3, %s646_s16 }
  0x42   : > { %170 = vst.msk [vmem:[#allocation2 + $0x30] sm:$0xff] %vm162_vm2, %v710_v0  ;;  %173 = vst.msk [vmem:[#allocation2 + $0x48] sm:$0xff] %vm162_vm2, %v710_v0  ;;  %p644_p4 = pneg %p643_p13  ;;  %p649_p7 = scmp.lt.s32.totalorder %s647_s20, %s641_s13 }
  0x43   : > { %160 = vst.msk [vmem:[#allocation2 + $0x42] sm:$0x1] %vm157_vm4, %v710_v0  ;;  %161 = vst.msk [vmem:[#allocation2 + $0x5a] sm:$0x1] %vm157_vm4, %v710_v0 }
  0x44   : > { %169 = vst.msk [vmem:[#allocation2 + $0x28] sm:$0x7] %vm165_vm5, %v710_v0  ;;  %166 = vst.msk [vmem:[#allocation2 + $0x10] sm:$0x7] %vm165_vm5, %v710_v0  ;;  %206 = vrot.lane.b32.xlu1 %v183_v7, %s711_s17  ;;  %204 = vrot.lane.b32.xlu0 %v182_v8, %s711_s17  ;;  %p650_p8 = por %p649_p7, %p648_p5 }
  0x45   : > { %172 = vst.msk [vmem:[#allocation2 + $0x40] sm:$0x7] %vm165_vm5, %v710_v0  ;;  %175 = vst.msk [vmem:[#allocation2 + $0x58] sm:$0x7] %vm165_vm5, %v710_v0 }
  0x46   : > { %p651_p10 = pnand %p650_p8, %p644_p4 }
  0xaa   : > { %v197_v9 = vpop.permute.xlu1 %196  ;;  %v193_v10 = vpop.permute.xlu0 %192 }
  0xab   : > { %219 = vst.msk [vmem:[#allocation2 + $0x1a] sm:$0xff] %vm216_vm6, %v197_v9  ;;  %217 = vst.msk [vmem:[#allocation2 + $0x2] sm:$0xff] %vm216_vm6, %v193_v10 }
  0xae   : > { %v199_v11 = vpop.permute.xlu1 %198  ;;  %v195_v12 = vpop.permute.xlu0 %194 }
  0xaf   : > { %220 = vst.msk [vmem:[#allocation2 + $0x22] sm:$0xff] %vm216_vm6, %v199_v11  ;;  %218 = vst.msk [vmem:[#allocation2 + $0xa] sm:$0xff] %vm216_vm6, %v195_v12 }
  0xb2   : > { %v203_v13 = vpop.permute.xlu1 %202  ;;  %v201_v14 = vpop.permute.xlu0 %200  ;;  %v225_v15 = vld [vmem:[#allocation2] sm:$0xff]  ;;  %v227_v20 = vld [vmem:[#allocation2 + $0x18] sm:$0xff] }
  0xb3   : > { %v241_v16 = vld [vmem:[#allocation2 + $0x1] sm:$0xff]  ;;  %222 = vst.msk [vmem:[#allocation2 + $0x3a] sm:$0xff] %vm216_vm6, %v203_v13  ;;  %221 = vst.msk [vmem:[#allocation2 + $0x32] sm:$0xff] %vm216_vm6, %v201_v14  ;;  %v233_v18 = vmul.f32 0.25, %v225_v15  ;;  %v243_v21 = vld [vmem:[#allocation2 + $0x19] sm:$0xff]  ;;  %v235_v23 = vmul.f32 0.25, %v227_v20 }
  0xb4   : > { %v265_v17 = vld [vmem:[#allocation2 + $0x2] sm:$0xff]  ;;  %v249_v19 = vmul.f32 0.75, %v241_v16  ;;  %v267_v22 = vld [vmem:[#allocation2 + $0x1a] sm:$0xff]  ;;  %v251_v24 = vmul.f32 0.75, %v243_v21 }
  0xb5   : > { %v275_v25 = vmul.f32 0.75, %v267_v22  ;;  %v273_v27 = vmul.f32 0.75, %v265_v17 }
  0xb6   : > { %v257_v26 = vadd.f32 %v249_v19, %v233_v18  ;;  %v207_v28 = vpop.permute.xlu1 %206  ;;  %v205_v29 = vpop.permute.xlu0 %204  ;;  %v289_v30 = vld [vmem:[#allocation2 + $0x3] sm:$0xff]  ;;  %v259_v33 = vadd.f32 %v251_v24, %v235_v23  ;;  %v290_v39 = vld [vmem:[#allocation2 + $0xb] sm:$0xff]  ;;  %v291_v40 = vld [vmem:[#allocation2 + $0x1b] sm:$0xff] }
  0xb7   : > { %v226_v31 = vld [vmem:[#allocation2 + $0x8] sm:$0xff]  ;;  %224 = vst.msk [vmem:[#allocation2 + $0x52] sm:$0xff] %vm216_vm6, %v207_v28  ;;  %223 = vst.msk [vmem:[#allocation2 + $0x4a] sm:$0xff] %vm216_vm6, %v205_v29  ;;  %v297_v35 = vmul.f32 0.25, %v289_v30  ;;  %v299_v43 = vmul.f32 0.25, %v291_v40  ;;  %v228_v44 = vld [vmem:[#allocation2 + $0x20] sm:$0xff] }
  0xb8   : > { %v242_v32 = vld [vmem:[#allocation2 + $0x9] sm:$0xff]  ;;  %v281_v34 = vadd.f32 %v273_v27, %v257_v26  ;;  %v234_v36 = vmul.f32 0.25, %v226_v31  ;;  %v283_v42 = vadd.f32 %v275_v25, %v259_v33  ;;  %v244_v45 = vld [vmem:[#allocation2 + $0x21] sm:$0xff]  ;;  %v236_v49 = vmul.f32 0.25, %v228_v44 }
  0xb9   : > { %v250_v37 = vmul.f32 0.75, %v242_v32  ;;  %v266_v38 = vld [vmem:[#allocation2 + $0xa] sm:$0xff]  ;;  %v268_v46 = vld [vmem:[#allocation2 + $0x22] sm:$0xff]  ;;  %v252_v50 = vmul.f32 0.75, %v244_v45  ;;  %v298_v52 = vmul.f32 0.25, %v290_v39 }
  0xba   : > { %v274_v41 = vmul.f32 0.75, %v266_v38  ;;  %v877_v47 = vadd.f32 %v297_v35, %v281_v34  ;;  %v292_v51 = vld [vmem:[#allocation2 + $0x23] sm:$0xff]  ;;  %v879_v53 = vadd.f32 %v299_v43, %v283_v42  ;;  %v276_v54 = vmul.f32 0.75, %v268_v46  ;;  %v229_v56 = vld [vmem:[#allocation2 + $0x30] sm:$0xff]  ;;  %v230_v0 = vld [vmem:[#allocation2 + $0x38] sm:$0xff] }
  0xbb   : > { %v258_v48 = vadd.f32 %v250_v37, %v234_v36  ;;  %v300_v55 = vmul.f32 0.25, %v292_v51  ;;  %v245_v57 = vld [vmem:[#allocation2 + $0x31] sm:$0xff]  ;;  %v260_v61 = vadd.f32 %v252_v50, %v236_v49  ;;  %v237_v62 = vmul.f32 0.25, %v229_v56  ;;  %v246_v1 = vld [vmem:[#allocation2 + $0x39] sm:$0xff] }
  0xbc   : > { %v269_v58 = vld [vmem:[#allocation2 + $0x32] sm:$0xff]  ;;  %v882_v59 = vmul.f32 0.75, %v877_v47  ;;  %v323_v2 = vmul.f32 0.75, %v879_v53  ;;  %v253_v3 = vmul.f32 0.75, %v245_v57  ;;  %v270_v5 = vld [vmem:[#allocation2 + $0x3a] sm:$0xff]  ;;  %v238_v9 = vmul.f32 0.25, %v230_v0 }
  0xbd   : > { %v282_v60 = vadd.f32 %v274_v41, %v258_v48  ;;  %v293_v63 = vld [vmem:[#allocation2 + $0x33] sm:$0xff]  ;;  %v277_v4 = vmul.f32 0.75, %v269_v58  ;;  %v294_v6 = vld [vmem:[#allocation2 + $0x3b] sm:$0xff]  ;;  %v284_v8 = vadd.f32 %v276_v54, %v260_v61  ;;  %v254_v10 = vmul.f32 0.75, %v246_v1 }
  0xbe   : > { %337 = vrot.lane.b32.xlu0 %v882_v59, %s712_s25  ;;  %v261_v11 = vadd.f32 %v253_v3, %v237_v62  ;;  %v301_v12 = vmul.f32 0.25, %v293_v63  ;;  %v278_v13 = vmul.f32 0.75, %v270_v5  ;;  %v302_v14 = vmul.f32 0.25, %v294_v6  ;;  %v231_v15 = vld [vmem:[#allocation2 + $0x48] sm:$0xff]  ;;  %v232_v23 = vld [vmem:[#allocation2 + $0x50] sm:$0xff] }
  0xbf   : > { %v306_v7 = vadd.f32 %v298_v52, %v282_v60  ;;  %v247_v16 = vld [vmem:[#allocation2 + $0x49] sm:$0xff]  ;;  %v308_v19 = vadd.f32 %v300_v55, %v284_v8  ;;  %v262_v20 = vadd.f32 %v254_v10, %v238_v9  ;;  %v239_v21 = vmul.f32 0.25, %v231_v15  ;;  %v248_v24 = vld [vmem:[#allocation2 + $0x51] sm:$0xff] }
  0xc0   : > { %v271_v17 = vld [vmem:[#allocation2 + $0x4a] sm:$0xff]  ;;  %v285_v25 = vadd.f32 %v277_v4, %v261_v11  ;;  %v255_v26 = vmul.f32 0.75, %v247_v16  ;;  %v272_v28 = vld [vmem:[#allocation2 + $0x52] sm:$0xff]  ;;  %v240_v31 = vmul.f32 0.25, %v232_v23  ;;  %v256_v32 = vmul.f32 0.75, %v248_v24 }
  0xc1   : > { %v322_v18 = vmul.f32 0.75, %v306_v7  ;;  %v295_v22 = vld [vmem:[#allocation2 + $0x4b] sm:$0xff]  ;;  %v279_v27 = vmul.f32 0.75, %v271_v17  ;;  %v296_v29 = vld [vmem:[#allocation2 + $0x53] sm:$0xff]  ;;  %v286_v30 = vadd.f32 %v278_v13, %v262_v20  ;;  %v280_v36 = vmul.f32 0.75, %v272_v28 }
  0xc2   : > { %341 = vrot.lane.b32.xlu0 %v323_v2, %s712_s25  ;;  %v309_v33 = vadd.f32 %v301_v12, %v285_v25  ;;  %v263_v34 = vadd.f32 %v255_v26, %v239_v21  ;;  %v303_v35 = vmul.f32 0.25, %v295_v22  ;;  %v324_v37 = vmul.f32 0.75, %v308_v19 }
  0xc3   : > { %339 = vrot.lane.b32.xlu1 %v322_v18, %s712_s25  ;;  %v310_v38 = vadd.f32 %v302_v14, %v286_v30  ;;  %v264_v39 = vadd.f32 %v256_v32, %v240_v31  ;;  %v304_v40 = vmul.f32 0.25, %v296_v29  ;;  %v313_v50 = vmul.f32 0.25, %v877_v47 }
  0xc4   : > { %v325_v41 = vmul.f32 0.75, %v309_v33  ;;  %v287_v42 = vadd.f32 %v279_v27, %v263_v34  ;;  %v314_v51 = vmul.f32 0.25, %v306_v7  ;;  %v315_v52 = vmul.f32 0.25, %v879_v53 }
  0xc5   : > { %v288_v43 = vadd.f32 %v280_v36, %v264_v39  ;;  %v326_v45 = vmul.f32 0.75, %v310_v38  ;;  %v316_v54 = vmul.f32 0.25, %v308_v19  ;;  %v317_v55 = vmul.f32 0.25, %v309_v33 }
  0xc6   : > { %345 = vrot.lane.b32.xlu0 %v325_v41, %s712_s25  ;;  %v311_v44 = vadd.f32 %v303_v35, %v287_v42  ;;  %v318_v56 = vmul.f32 0.25, %v310_v38 }
  0xc7   : > { %343 = vrot.lane.b32.xlu1 %v324_v37, %s712_s25  ;;  %v312_v46 = vadd.f32 %v304_v40, %v288_v43 }
  0xc8   : > { %v327_v48 = vmul.f32 0.75, %v311_v44  ;;  %v319_v57 = vmul.f32 0.25, %v311_v44 }
  0xc9   : > { %v328_v49 = vmul.f32 0.75, %v312_v46  ;;  %v320_v58 = vmul.f32 0.25, %v312_v46 }
  0xca   : > { %349 = vrot.lane.b32.xlu0 %v327_v48, %s712_s25 }
  0xcb   : > { %347 = vrot.lane.b32.xlu1 %v326_v45, %s712_s25 }
  0xce   : > { %369 = vrot.lane.b32.xlu0 %v882_v59, %s713_s27 }
  0xcf   : > { %351 = vrot.lane.b32.xlu1 %v328_v49, %s712_s25 }
  0xd2   : > { %373 = vrot.lane.b32.xlu0 %v323_v2, %s713_s27 }
  0xd3   : > { %371 = vrot.lane.b32.xlu1 %v322_v18, %s713_s27 }
  0xd6   : > { %377 = vrot.lane.b32.xlu0 %v325_v41, %s713_s27 }
  0xd7   : > { %375 = vrot.lane.b32.xlu1 %v324_v37, %s713_s27 }
  0xda   : > { %381 = vrot.lane.b32.xlu0 %v327_v48, %s713_s27 }
  0xdb   : > { %379 = vrot.lane.b32.xlu1 %v326_v45, %s713_s27 }
  0xde   : > { %409 = vrot.lane.b32.xlu0 %v313_v50, %s714_s28 }
  0xdf   : > { %383 = vrot.lane.b32.xlu1 %v328_v49, %s713_s27 }
  0xe2   : > { %413 = vrot.lane.b32.xlu0 %v315_v52, %s714_s28 }
  0xe3   : > { %411 = vrot.lane.b32.xlu1 %v314_v51, %s714_s28 }
  0xe6   : > { %417 = vrot.lane.b32.xlu0 %v317_v55, %s714_s28 }
  0xe7   : > { %415 = vrot.lane.b32.xlu1 %v316_v54, %s714_s28 }
  0xea   : > { %421 = vrot.lane.b32.xlu0 %v319_v57, %s714_s28 }
  0xeb   : > { %419 = vrot.lane.b32.xlu1 %v318_v56, %s714_s28 }
  0xef   : > { %423 = vrot.lane.b32.xlu1 %v320_v58, %s714_s28 }
 0x130   : > { %v338_v59 = vpop.permute.xlu0 %337 }
 0x131   : > { %v361_v8 = vadd.f32 %v338_v59, %v313_v50 }
 0x134   : > { %v342_v60 = vpop.permute.xlu0 %341 }
 0x135   : > { %v340_v47 = vpop.permute.xlu1 %339  ;;  %v363_v13 = vadd.f32 %v342_v60, %v315_v52 }
 0x136   : > { %v362_v11 = vadd.f32 %v340_v47, %v314_v51 }
 0x138   : > { %v346_v62 = vpop.permute.xlu0 %345 }
 0x139   : > { %v344_v61 = vpop.permute.xlu1 %343  ;;  %v365_v21 = vadd.f32 %v346_v62, %v317_v55 }
 0x13a   : > { %v364_v18 = vadd.f32 %v344_v61, %v316_v54 }
 0x13c   : > { %v350_v0 = vpop.permute.xlu0 %349 }
 0x13d   : > { %v348_v63 = vpop.permute.xlu1 %347  ;;  %v367_v29 = vadd.f32 %v350_v0, %v319_v57 }
 0x13e   : > { %v366_v26 = vadd.f32 %v348_v63, %v318_v56 }
 0x140   : > { %v370_v1 = vpop.permute.xlu0 %369 }
 0x141   : > { %v352_v53 = vpop.permute.xlu1 %351  ;;  %v393_v9 = vadd.f32 %v370_v1, %v361_v8 }
 0x142   : > { %v368_v34 = vadd.f32 %v352_v53, %v320_v58 }
 0x144   : > { %v374_v3 = vpop.permute.xlu0 %373 }
 0x145   : > { %v372_v2 = vpop.permute.xlu1 %371  ;;  %v395_v16 = vadd.f32 %v374_v3, %v363_v13 }
 0x146   : > { %v394_v15 = vadd.f32 %v372_v2, %v362_v11 }
 0x148   : > { %v378_v5 = vpop.permute.xlu0 %377 }
 0x149   : > { %v376_v4 = vpop.permute.xlu1 %375  ;;  %v397_v24 = vadd.f32 %v378_v5, %v365_v21 }
 0x14a   : > { %v396_v23 = vadd.f32 %v376_v4, %v364_v18 }
 0x14c   : > { %v382_v7 = vpop.permute.xlu0 %381 }
 0x14d   : > { %v380_v6 = vpop.permute.xlu1 %379  ;;  %v399_v32 = vadd.f32 %v382_v7, %v367_v29 }
 0x14e   : > { %v398_v31 = vadd.f32 %v380_v6, %v366_v26 }
 0x150   : > { %v410_v12 = vpop.permute.xlu0 %409 }
 0x151   : > { %v384_v10 = vpop.permute.xlu1 %383  ;;  %v433_v14 = vadd.f32 %v410_v12, %v393_v9 }
 0x152   : > { %v400_v38 = vadd.f32 %v384_v10, %v368_v34 }
 0x153   : > { %442 = vst.msk [vmem:[%s899_s29] sm:$0xff] %vm441_vm7, %v433_v14 }
 0x154   : > { %v414_v20 = vpop.permute.xlu0 %413 }
 0x155   : > { %v412_v17 = vpop.permute.xlu1 %411  ;;  %v435_v22 = vadd.f32 %v414_v20, %v395_v16 }
 0x156   : > { %v434_v19 = vadd.f32 %v412_v17, %v394_v15 }
 0x157   : > { %444 = vst.msk [vmem:[%s899_s29 + $0x10] sm:$0xff] %vm441_vm7, %v435_v22 }
 0x158   : > { %443 = vst.msk [vmem:[%s899_s29 + $0x8] sm:$0xff] %vm441_vm7, %v434_v19  ;;  %v418_v28 = vpop.permute.xlu0 %417 }
 0x159   : > { %v416_v25 = vpop.permute.xlu1 %415  ;;  %v437_v30 = vadd.f32 %v418_v28, %v397_v24 }
 0x15a   : > { %v436_v27 = vadd.f32 %v416_v25, %v396_v23 }
 0x15b   : > { %446 = vst.msk [vmem:[%s899_s29 + $0x20] sm:$0xff] %vm441_vm7, %v437_v30 }
 0x15c   : > { %445 = vst.msk [vmem:[%s899_s29 + $0x18] sm:$0xff] %vm441_vm7, %v436_v27  ;;  %v422_v36 = vpop.permute.xlu0 %421 }
 0x15d   : > { %v420_v33 = vpop.permute.xlu1 %419  ;;  %v439_v37 = vadd.f32 %v422_v36, %v399_v32 }
 0x15e   : > { %v438_v35 = vadd.f32 %v420_v33, %v398_v31 }
 0x15f   : > { %448 = vst.msk [vmem:[%s899_s29 + $0x30] sm:$0xff] %vm441_vm7, %v439_v37 }
 0x160   : > { %447 = vst.msk [vmem:[%s899_s29 + $0x28] sm:$0xff] %vm441_vm7, %v438_v35 }
 0x161   : > { %v424_v39 = vpop.permute.xlu1 %423 }
 0x162   : > { %v440_v40 = vadd.f32 %v424_v39, %v400_v38 }
 0x164   : > { %449 = vst.msk [vmem:[%s899_s29 + $0x38] sm:$0xff] %vm441_vm7, %v440_v40 }
 0x165   : > { %654 = shalt.err (!%p651_p10)
}
 0x166   : > { %s655_s21 = scalar_lea.hbm %s920_s11, 1024  ;;  %s659_s26 = scalar_lea.hbm %s968_s1, 2048 }
 0x167   : > { %p656_p0 = scmp.ne.s32.totalorder %s920_s11, %s655_s21  ;;  %p660_p1 = scmp.lt.s32.totalorder %s920_s11, %s968_s1 }
 0x168   : > { %p661_p3 = scmp.lt.s32.totalorder %s659_s26, %s655_s21 }
 0x169   : > { %p657_p2 = pnand %p656_p0, %p977_p12 }
 0x16a   : > { %p662_p6 = por %p661_p3, %p660_p1 }
 0x16b   : > { %p658_p9 = pneg %p657_p2 }
 0x16d   : > { %p663_p11 = pnand %p662_p6, %p658_p9 }
 0x16f   : > { %666 = shalt.err (!%p663_p11)
}
 0x170   : > { %s716_s25 = smov 128   ;;  %s717_s27 = smov 8  }
 0x171   : > { %560 = dma.vmem_to_hbm [thread:$0]  (%p977_p12), %s922_s3, 1024, %s920_s11, %s451_s10, %s716_s25, %s716_s25, %s717_s27  }
 0x172 PF: > { %s480_s28 = sand.u32 1, %s693_s6   ;;  %p978_p13 = scmp.ne.s32.totalorder %s974_s19, 0 }
 0x173   : > { %p979_p4 = scmp.ge.s32.totalorder %s705_s9, 2  ;;  %s481_s29 = scalar_lea.sflag [#allocation5], %s480_s28 }
 0x175   : > { %p567_p5 = pnand %p979_p4, %p978_p13 }
 0x177   : > { %p568_p7 = pneg %p567_p5 }
 0x179   : > { %688 = dma.done.wait (%p568_p7), %s481_s29, 1024  }
 0x17a   : > { %690 = vsyncadd (%p568_p7), %s481_s29, 4294966272  ;;  %p14_p8 = scmp.ge.s32.totalorder %s753_s12, 4   ;;  %s980_s6 = smov %s697_s7 }
 0x17b   : > { %s981_s7 = smov %s701_s8  ;;  %s982_s8 = smov %s765_s15 }
 0x17c   : > { %s983_s9 = smov %s753_s12  ;;  %16 = sbr.rel (!%p14_p8) target bundleno = 5 (0x5), region = 69 }
 0x181   :  { %486 = vsyncpa [#allocation4], 1 }
 0x182   :  { %488 = vsyncpa [#allocation4 + $0x1], 1 }
 0x183   :  { %489 = vsyncpa [#allocation5], 1 }
 0x184   :  { %491 = vsyncpa [#allocation5 + $0x1], 1 }

</bundles_post_ra>
